<compile_context>
chip_gen: v5e
topology: v5e:2x2
jax: 0.10.0
libtpu: 0.0.40
codegen_flags: <defaults>
</compile_context>

<pallas_src>
import jax
import jax.numpy as jnp
from jax.experimental import pallas as pl
from jax.experimental.pallas import tpu as pltpu

EPS = 1e-5


def _rtfm_kernel(x_ref, w1_ref, b1_ref, w2_ref, b2_ref, w3_ref, b3_ref, out_ref):
    x = x_ref[...]                                                    # (tm, C) bf16

    # conv1 (+ folded bn1) + relu
    h = jnp.dot(x, w1_ref[...], preferred_element_type=jnp.float32) + b1_ref[...]
    h = jnp.maximum(h, 0.0)

    # conv2 (+ folded bn2) + relu
    h = jnp.dot(h.astype(jnp.bfloat16), w2_ref[...],
                preferred_element_type=jnp.float32) + b2_ref[...]
    h = jnp.maximum(h, 0.0)

    # conv3: N=1, K=8 -> VPU multiply + lane reduce (skip MXU push/drain), sigmoid
    o = jnp.sum(h * w3_ref[...], axis=-1, keepdims=True) + b3_ref[...]
    out_ref[...] = jax.nn.sigmoid(o)                                  # (tm, 1)


def _round_up(n, m):
    return ((n + m - 1) // m) * m


def _full_spec(shape):
    nd = len(shape)
    return pl.BlockSpec(shape, lambda i, _nd=nd: (0,) * _nd)


def rtfm_cls_head(x, p, *, tm=1024):
    """x: (B, T, C) float32  ->  (B, 1, T) float32 (same as PyTorch output)."""
    B, T, C = x.shape
    M = B * T

    # ---- host-side BN folding: w' = w * g*rsqrt(v+eps), b' = (b-m)*s + beta ----
    s1 = p["g1"] * jax.lax.rsqrt(p["v1"] + EPS)
    w1 = (p["w1"] * s1).astype(jnp.bfloat16)            # (C,  C1) bf16
    b1 = (p["b1"] - p["m1"]) * s1 + p["be1"]            # (1,  C1) f32
    s2 = p["g2"] * jax.lax.rsqrt(p["v2"] + EPS)
    w2 = (p["w2"] * s2).astype(jnp.bfloat16)            # (C1, C2) bf16
    b2 = (p["b2"] - p["m2"]) * s2 + p["be2"]            # (1,  C2) f32
    w3 = p["w3"].reshape(1, -1).astype(jnp.float32)     # (1,  C2) f32 (VPU path)
    b3 = p["b3"]                                        # (1,  1)  f32
    C1 = w1.shape[1]
    C2 = w2.shape[1]

    # ---- tiling: large row tiles, shrunk for small inputs, ragged M padded ----
    # tm=1024 keeps the double-buffered bf16 x tile at 2 MiB (safe on v5e's
    # 16 MiB default scoped VMEM); multiple of 16 for bf16 sublane packing.
    tm_eff = _round_up(min(tm, _round_up(M, 16)), 16)
    M_pad = _round_up(M, tm_eff)
    grid = M_pad // tm_eff

    xm = x.reshape(M, C).astype(jnp.bfloat16)
    if M_pad != M:
        xm = jnp.pad(xm, ((0, M_pad - M), (0, 0)))

    out = pl.pallas_call(
        _rtfm_kernel,
        out_shape=jax.ShapeDtypeStruct((M_pad, 1), jnp.float32),
        grid=(grid,),
        in_specs=[
            pl.BlockSpec((tm_eff, C), lambda i: (i, 0)),              # x rows
            _full_spec((C, C1)), _full_spec((1, C1)),                 # conv1'
            _full_spec((C1, C2)), _full_spec((1, C2)),                # conv2'
            _full_spec((1, C2)), _full_spec((1, 1)),                  # conv3
        ],
        out_specs=pl.BlockSpec((tm_eff, 1), lambda i: (i, 0)),
        compiler_params=pltpu.CompilerParams(
            dimension_semantics=("parallel",)),                       # megacore shard (v7x)
    )(xm, w1, b1, w2, b2, w3, b3)

    return out[:M].reshape(B, T, 1).transpose(0, 2, 1)                # (B, 1, T)


def init_params(key, in_channel=512):
    c1, c2 = in_channel // 16, in_channel // 64
    ks = jax.random.split(key, 12)

    def w(k, shape, scale=0.05):
        return (scale * jax.random.normal(k, shape)).astype(jnp.float32)

    return {
        # conv weights stored as (in, out) for x @ W
        "w1": w(ks[0], (in_channel, c1)), "b1": w(ks[1], (1, c1)),
        "g1": 1.0 + w(ks[2], (1, c1)), "be1": w(ks[3], (1, c1)),
        "m1": w(ks[4], (1, c1)),
        "v1": jax.random.uniform(ks[5], (1, c1), minval=0.5, maxval=1.5).astype(jnp.float32),
        "w2": w(ks[6], (c1, c2)), "b2": w(ks[7], (1, c2)),
        "g2": 1.0 + w(ks[8], (1, c2)), "be2": w(ks[9], (1, c2)),
        "m2": w(ks[10], (1, c2)),
        "v2": jax.random.uniform(ks[11], (1, c2), minval=0.5, maxval=1.5).astype(jnp.float32),
        "w3": w(jax.random.fold_in(key, 99), (c2, 1)),
        "b3": jnp.zeros((1, 1), jnp.float32),
    }


def rtfm_ref(x, p):
    """Pure-JAX f32 reference with the original (un-folded) BN math."""
    B, T, C = x.shape
    h = x.reshape(B * T, C)
    h = h @ p["w1"] + p["b1"]
    h = (h - p["m1"]) / jnp.sqrt(p["v1"] + EPS) * p["g1"] + p["be1"]
    h = jnp.maximum(h, 0.0)
    h = h @ p["w2"] + p["b2"]
    h = (h - p["m2"]) / jnp.sqrt(p["v2"] + EPS) * p["g2"] + p["be2"]
    h = jnp.maximum(h, 0.0)
    o = jax.nn.sigmoid(h @ p["w3"] + p["b3"])
    return o.reshape(B, T, 1).transpose(0, 2, 1)


if __name__ == "__main__":
    key = jax.random.PRNGKey(0)
    kx, kp = jax.random.split(key)

    B, T, C = 2, 16, 512               # in_channel=512 (module default); small B, T
    x = jax.random.normal(kx, (B, T, C), dtype=jnp.float32)
    params = init_params(kp, in_channel=C)

    out = rtfm_cls_head(x, params)
    out = jax.block_until_ready(out)

    ref = rtfm_ref(x, params)
    assert out.shape == (B, 1, T), out.shape
    assert jnp.all(jnp.isfinite(out))
    assert jnp.max(jnp.abs(out - ref)) < 2e-2, float(jnp.max(jnp.abs(out - ref)))

    print("KERNEL_OK")
</pallas_src>

<mosaic_0001>
module attributes {stable_mosaic.version = 11 : i64} {
  func.func @_rtfm_kernel(%arg0: i32, %arg1: memref<32x512xbf16, #tpu.memory_space<vmem>>, %arg2: memref<512x32xbf16, #tpu.memory_space<vmem>>, %arg3: memref<1x32xf32, #tpu.memory_space<vmem>>, %arg4: memref<32x8xbf16, #tpu.memory_space<vmem>>, %arg5: memref<1x8xf32, #tpu.memory_space<vmem>>, %arg6: memref<1x8xf32, #tpu.memory_space<vmem>>, %arg7: memref<1x1xf32, #tpu.memory_space<vmem>>, %arg8: memref<32x1xf32, #tpu.memory_space<vmem>>) attributes {dimension_semantics = [#tpu.dimension_semantics<parallel>], iteration_bounds = array<i64: 1>, scalar_prefetch = 0 : i64, scratch_operands = 0 : i64, tpu.core_type = #tpu.core_type<tc>, window_params = [{transform_indices = @transform_0, window_bounds = array<i64: 32, 512>}, {pipeline_mode = #tpu.pipeline_mode<synchronous>, transform_indices = @transform_1, window_bounds = array<i64: 512, 32>}, {pipeline_mode = #tpu.pipeline_mode<synchronous>, transform_indices = @transform_2, window_bounds = array<i64: 1, 32>}, {pipeline_mode = #tpu.pipeline_mode<synchronous>, transform_indices = @transform_3, window_bounds = array<i64: 32, 8>}, {pipeline_mode = #tpu.pipeline_mode<synchronous>, transform_indices = @transform_4, window_bounds = array<i64: 1, 8>}, {pipeline_mode = #tpu.pipeline_mode<synchronous>, transform_indices = @transform_5, window_bounds = array<i64: 1, 8>}, {pipeline_mode = #tpu.pipeline_mode<synchronous>, transform_indices = @transform_6, window_bounds = array<i64: 1, 1>}, {transform_indices = @transform_7, window_bounds = array<i64: 32, 1>}]} {
    %c0 = arith.constant 0 : index
    %c0_0 = arith.constant 0 : index
    %0 = vector.load %arg1[%c0, %c0_0] : memref<32x512xbf16, #tpu.memory_space<vmem>>, vector<32x512xbf16>
    %c0_1 = arith.constant 0 : index
    %c0_2 = arith.constant 0 : index
    %1 = vector.load %arg2[%c0_1, %c0_2] : memref<512x32xbf16, #tpu.memory_space<vmem>>, vector<512x32xbf16>
    %cst = arith.constant dense<0.000000e+00> : vector<32x32xf32>
    %2 = tpu.matmul %0, %1, %cst {dimension_numbers = #tpu.dot_dimension_numbers<[1], [0], [0], [1], [0, 0, 1, 1], [], []>} : vector<32x512xbf16>, vector<512x32xbf16>, vector<32x32xf32> -> vector<32x32xf32>
    %c0_3 = arith.constant 0 : index
    %c0_4 = arith.constant 0 : index
    %3 = vector.load %arg3[%c0_3, %c0_4] : memref<1x32xf32, #tpu.memory_space<vmem>>, vector<1x32xf32>
    %4 = vector.broadcast %3 : vector<1x32xf32> to vector<32x32xf32>
    %5 = arith.addf %2, %4 : vector<32x32xf32>
    %cst_5 = arith.constant 0.000000e+00 : f32
    %6 = vector.broadcast %cst_5 : f32 to vector<32x32xf32>
    %7 = arith.maximumf %5, %6 : vector<32x32xf32>
    %8 = arith.truncf %7 : vector<32x32xf32> to vector<32x32xbf16>
    %c0_6 = arith.constant 0 : index
    %c0_7 = arith.constant 0 : index
    %9 = vector.load %arg4[%c0_6, %c0_7] : memref<32x8xbf16, #tpu.memory_space<vmem>>, vector<32x8xbf16>
    %cst_8 = arith.constant dense<0.000000e+00> : vector<32x8xf32>
    %10 = tpu.matmul %8, %9, %cst_8 {dimension_numbers = #tpu.dot_dimension_numbers<[1], [0], [0], [1], [0, 0, 1, 1], [], []>} : vector<32x32xbf16>, vector<32x8xbf16>, vector<32x8xf32> -> vector<32x8xf32>
    %c0_9 = arith.constant 0 : index
    %c0_10 = arith.constant 0 : index
    %11 = vector.load %arg5[%c0_9, %c0_10] : memref<1x8xf32, #tpu.memory_space<vmem>>, vector<1x8xf32>
    %12 = vector.broadcast %11 : vector<1x8xf32> to vector<32x8xf32>
    %13 = arith.addf %10, %12 : vector<32x8xf32>
    %cst_11 = arith.constant 0.000000e+00 : f32
    %14 = vector.broadcast %cst_11 : f32 to vector<32x8xf32>
    %15 = arith.maximumf %13, %14 : vector<32x8xf32>
    %c0_12 = arith.constant 0 : index
    %c0_13 = arith.constant 0 : index
    %16 = vector.load %arg6[%c0_12, %c0_13] : memref<1x8xf32, #tpu.memory_space<vmem>>, vector<1x8xf32>
    %17 = vector.broadcast %16 : vector<1x8xf32> to vector<32x8xf32>
    %18 = arith.mulf %15, %17 : vector<32x8xf32>
    %cst_14 = arith.constant dense<0.000000e+00> : vector<32xf32>
    %19 = vector.multi_reduction <add>, %18, %cst_14 [1] : vector<32x8xf32> to vector<32xf32>
    %20 = vector.shape_cast %19 : vector<32xf32> to vector<32x1xf32>
    %c0_15 = arith.constant 0 : index
    %c0_16 = arith.constant 0 : index
    %21 = vector.load %arg7[%c0_15, %c0_16] : memref<1x1xf32, #tpu.memory_space<vmem>>, vector<1x1xf32>
    %22 = vector.broadcast %21 : vector<1x1xf32> to vector<32x1xf32>
    %23 = arith.addf %20, %22 : vector<32x1xf32>
    %24 = arith.negf %23 : vector<32x1xf32>
    %25 = math.exp %24 : vector<32x1xf32>
    %cst_17 = arith.constant 1.000000e+00 : f32
    %26 = vector.broadcast %cst_17 : f32 to vector<32x1xf32>
    %27 = arith.addf %26, %25 : vector<32x1xf32>
    %28 = arith.divf %26, %27 : vector<32x1xf32>
    %c0_18 = arith.constant 0 : index
    %c0_19 = arith.constant 0 : index
    %29 = vector.load %arg8[%c0_18, %c0_19] : memref<32x1xf32, #tpu.memory_space<vmem>>, vector<32x1xf32>
    tpu.vector_store %arg8[%c0_18, %c0_19], %28 {strides = array<i32>} : memref<32x1xf32, #tpu.memory_space<vmem>>, vector<32x1xf32>,
    return
  }
  func.func @transform_0(%arg0: i32) -> (i32, i32) {
    %c0_i32 = arith.constant 0 : i32
    %c0_i32_0 = arith.constant 0 : i32
    return %arg0, %c0_i32 : i32, i32
  }
  func.func @transform_1(%arg0: i32) -> (i32, i32) {
    %c0_i32 = arith.constant 0 : i32
    %c0_i32_0 = arith.constant 0 : i32
    %c0_i32_1 = arith.constant 0 : i32
    return %c0_i32, %c0_i32_0 : i32, i32
  }
  func.func @transform_2(%arg0: i32) -> (i32, i32) {
    %c0_i32 = arith.constant 0 : i32
    %c0_i32_0 = arith.constant 0 : i32
    %c0_i32_1 = arith.constant 0 : i32
    return %c0_i32, %c0_i32_0 : i32, i32
  }
  func.func @transform_3(%arg0: i32) -> (i32, i32) {
    %c0_i32 = arith.constant 0 : i32
    %c0_i32_0 = arith.constant 0 : i32
    %c0_i32_1 = arith.constant 0 : i32
    return %c0_i32, %c0_i32_0 : i32, i32
  }
  func.func @transform_4(%arg0: i32) -> (i32, i32) {
    %c0_i32 = arith.constant 0 : i32
    %c0_i32_0 = arith.constant 0 : i32
    %c0_i32_1 = arith.constant 0 : i32
    return %c0_i32, %c0_i32_0 : i32, i32
  }
  func.func @transform_5(%arg0: i32) -> (i32, i32) {
    %c0_i32 = arith.constant 0 : i32
    %c0_i32_0 = arith.constant 0 : i32
    %c0_i32_1 = arith.constant 0 : i32
    return %c0_i32, %c0_i32_0 : i32, i32
  }
  func.func @transform_6(%arg0: i32) -> (i32, i32) {
    %c0_i32 = arith.constant 0 : i32
    %c0_i32_0 = arith.constant 0 : i32
    %c0_i32_1 = arith.constant 0 : i32
    return %c0_i32, %c0_i32_0 : i32, i32
  }
  func.func @transform_7(%arg0: i32) -> (i32, i32) {
    %c0_i32 = arith.constant 0 : i32
    %c0_i32_0 = arith.constant 0 : i32
    return %arg0, %c0_i32 : i32, i32
  }
}

</mosaic_0001>

<bundles_post_ra>
// kernel: tpu_custom_call.1
= control target key start
LH: loop header
LB: loop body
LE: loop exit
PB: predicated region body
PF: predicated region fallthrough
CT: control target
= control target key end

     0   :  { %vm439_vm0 = vcmask 261120   ;;  %vm477_vm1 = vcmask 64512   ;;  %vm574_vm4 = vcmask 7168   ;;  %s1045_s1 = inlined_call_operand.vmem [shape: bf16[512,32], index: 1, kind: input, shape index: {}]   ;;  %s1046_s2 = inlined_call_operand.vmem [shape: f32[1,32], index: 2, kind: input, shape index: {}]   ;;  %s1047_s0 = inlined_call_operand.vmem [shape: bf16[32,512], index: 0, kind: input, shape index: {}]   ;;  %s1048_s4 = inlined_call_operand.vmem [shape: f32[1,8], index: 4, kind: input, shape index: {}]   ;;  %s1049_s3 = inlined_call_operand.vmem [shape: bf16[32,8], index: 3, kind: input, shape index: {}]   ;;  %s1050_s5 = inlined_call_operand.vmem [shape: f32[1,8], index: 5, kind: input, shape index: {}]   ;;  %s1051_s6 = inlined_call_operand.<no memory space> [shape: f32[1,1], index: 6, kind: input, shape index: {}]   ;;  %s1052_s7 = inlined_call_operand.vmem [shape: f32[32,1], index: 7, kind: output, shape index: {}]  }
   0x1   :  { %v772_v0 = vld [vmem:[%s1045_s1 + $0x38] sm:$0xff]  ;;  %v771_v4 = vld [vmem:[%s1045_s1 + $0x30] sm:$0xff]  ;;  %v770_v8 = vld [vmem:[%s1045_s1 + $0x28] sm:$0xff] }
   0x2   :  { %v780_v1 = vld [vmem:[%s1045_s1 + $0x78] sm:$0xff]  ;;  %337 = vmatpush.bf16.msra.mxu0 %v772_v0  ;;  %v779_v5 = vld [vmem:[%s1045_s1 + $0x70] sm:$0xff]  ;;  %v778_v9 = vld [vmem:[%s1045_s1 + $0x68] sm:$0xff] }
   0x3   :  { %v788_v2 = vld [vmem:[%s1045_s1 + $0xb8] sm:$0xff]  ;;  %356 = vmatpush.bf16.msra.mxu1 %v780_v1  ;;  %v787_v6 = vld [vmem:[%s1045_s1 + $0xb0] sm:$0xff]  ;;  %v786_v10 = vld [vmem:[%s1045_s1 + $0xa8] sm:$0xff] }
   0x4   :  { %v796_v3 = vld [vmem:[%s1045_s1 + $0xf8] sm:$0xff]  ;;  %375 = vmatpush.bf16.msra.mxu2 %v788_v2  ;;  %v795_v7 = vld [vmem:[%s1045_s1 + $0xf0] sm:$0xff]  ;;  %v794_v11 = vld [vmem:[%s1045_s1 + $0xe8] sm:$0xff] }
   0x5   :  { %394 = vmatpush.bf16.msra.mxu3 %v796_v3  ;;  %v769_v12 = vld [vmem:[%s1045_s1 + $0x20] sm:$0xff]  ;;  %v768_v16 = vld [vmem:[%s1045_s1 + $0x18] sm:$0xff]  ;;  %v767_v20 = vld [vmem:[%s1045_s1 + $0x10] sm:$0xff] }
   0x6   :  { %338 = vmatpush.bf16.msra.mxu0 %v771_v4  ;;  %v777_v13 = vld [vmem:[%s1045_s1 + $0x60] sm:$0xff]  ;;  %v776_v17 = vld [vmem:[%s1045_s1 + $0x58] sm:$0xff]  ;;  %v775_v21 = vld [vmem:[%s1045_s1 + $0x50] sm:$0xff] }
   0x7   :  { %357 = vmatpush.bf16.msra.mxu1 %v779_v5  ;;  %v785_v14 = vld [vmem:[%s1045_s1 + $0xa0] sm:$0xff]  ;;  %v784_v18 = vld [vmem:[%s1045_s1 + $0x98] sm:$0xff]  ;;  %v783_v22 = vld [vmem:[%s1045_s1 + $0x90] sm:$0xff] }
   0x8   :  { %376 = vmatpush.bf16.msra.mxu2 %v787_v6  ;;  %v793_v15 = vld [vmem:[%s1045_s1 + $0xe0] sm:$0xff]  ;;  %v792_v19 = vld [vmem:[%s1045_s1 + $0xd8] sm:$0xff]  ;;  %v791_v23 = vld [vmem:[%s1045_s1 + $0xd0] sm:$0xff] }
   0x9   :  { %395 = vmatpush.bf16.msra.mxu3 %v795_v7  ;;  %v766_v24 = vld [vmem:[%s1045_s1 + $0x8] sm:$0xff]  ;;  %v765_v28 = vld [vmem:[%s1045_s1] sm:$0xff]  ;;  %v759_v33 = vld [vmem:[%s1047_s0 + $0xc] sm:$0xf0] }
   0xa   :  { %339 = vmatpush.bf16.msra.mxu0 %v770_v8  ;;  %v774_v25 = vld [vmem:[%s1045_s1 + $0x48] sm:$0xff]  ;;  %v773_v29 = vld [vmem:[%s1045_s1 + $0x40] sm:$0xff]  ;;  %v587_v35 = vld [vmem:[%s1047_s0 + $0x10] sm:$0xf0] }
   0xb   :  { %358 = vmatpush.bf16.msra.mxu1 %v778_v9  ;;  %v782_v26 = vld [vmem:[%s1045_s1 + $0x88] sm:$0xff]  ;;  %v781_v30 = vld [vmem:[%s1045_s1 + $0x80] sm:$0xff]  ;;  %v760_v37 = vld [vmem:[%s1047_s0 + $0x14] sm:$0xf0] }
   0xc   :  { %377 = vmatpush.bf16.msra.mxu2 %v786_v10  ;;  %v790_v27 = vld [vmem:[%s1045_s1 + $0xc8] sm:$0xff]  ;;  %v789_v31 = vld [vmem:[%s1045_s1 + $0xc0] sm:$0xff]  ;;  %v595_v39 = vld [vmem:[%s1047_s0 + $0x18] sm:$0xf0] }
   0xd   :  { %396 = vmatpush.bf16.msra.mxu3 %v794_v11  ;;  %v585_v32 = vld [vmem:[%s1047_s0] sm:$0xf]  ;;  %v757_v34 = vld [vmem:[%s1047_s0 + $0x4] sm:$0xf]  ;;  %v593_v36 = vld [vmem:[%s1047_s0 + $0x8] sm:$0xf] }
   0xe   :  { %340 = vmatpush.bf16.msra.mxu0 %v769_v12  ;;  %v758_v38 = vld [vmem:[%s1047_s0 + $0xc] sm:$0xf]  ;;  %v586_v40 = vor.u32 %v759_v33, %v585_v32  ;;  %v590_v41 = vor.u32 %v757_v34, %v587_v35  ;;  %v594_v42 = vor.u32 %v760_v37, %v593_v36  ;;  %v601_v44 = vld [vmem:[%s1047_s0 + $0x20] sm:$0xf]  ;;  %v763_v45 = vld [vmem:[%s1047_s0 + $0x2c] sm:$0xf0]  ;;  %v12_v35 = vstv %s1051_s6 }
   0xf   :  { %359 = vmatpush.bf16.msra.mxu1 %v777_v13  ;;  %v598_v43 = vor.u32 %v758_v38, %v595_v39  ;;  %v761_v46 = vld [vmem:[%s1047_s0 + $0x24] sm:$0xf]  ;;  %v603_v47 = vld [vmem:[%s1047_s0 + $0x30] sm:$0xf0]  ;;  %v609_v48 = vld [vmem:[%s1047_s0 + $0x28] sm:$0xf]  ;;  %v602_v52 = vor.u32 %v763_v45, %v601_v44 }
  0x10   :  { %378 = vmatpush.bf16.msra.mxu2 %v785_v14  ;;  %v764_v49 = vld [vmem:[%s1047_s0 + $0x34] sm:$0xf0]  ;;  %v762_v50 = vld [vmem:[%s1047_s0 + $0x2c] sm:$0xf]  ;;  %v611_v51 = vld [vmem:[%s1047_s0 + $0x38] sm:$0xf0]  ;;  %v606_v53 = vor.u32 %v761_v46, %v603_v47 }
  0x11   :  { %397 = vmatpush.bf16.msra.mxu3 %v793_v15  ;;  %v610_v54 = vor.u32 %v764_v49, %v609_v48  ;;  %v614_v55 = vor.u32 %v762_v50, %v611_v51  ;;  %v798_v56 = vld [vmem:[%s1049_s3 + $0x8] sm:$0xff]  ;;  %v797_v57 = vld [vmem:[%s1049_s3] sm:$0xff]  ;;  %13 = vst [vmem:[#allocation2] sm:$0x1] %v12_v35 }
  0x12   :  { %341 = vmatpush.bf16.msra.mxu0 %v768_v16  ;;  %v801_v58 = vld [vmem:[%s1046_s2] ss:$0 sm:$0xff] }
  0x13   :  { %360 = vmatpush.bf16.msra.mxu1 %v776_v17  ;;  %v802_v33 = vld [vmem:[%s1048_s4] ss:$0 sm:$0xff] }
  0x14   :  { %379 = vmatpush.bf16.msra.mxu2 %v784_v18  ;;  %v803_v37 = vld [vmem:[%s1050_s5] ss:$0 sm:$0xff] }
  0x15   :  { %398 = vmatpush.bf16.msra.mxu3 %v792_v19 }
  0x16   :  { %342 = vmatpush.bf16.msra.mxu0 %v767_v20 }
  0x17   :  { %361 = vmatpush.bf16.msra.mxu1 %v775_v21 }
  0x18   :  { %380 = vmatpush.bf16.msra.mxu2 %v783_v22 }
  0x19   :  { %399 = vmatpush.bf16.msra.mxu3 %v791_v23 }
  0x1a   :  { %343 = vmatpush.bf16.msra.mxu0 %v766_v24 }
  0x1b   :  { %362 = vmatpush.bf16.msra.mxu1 %v774_v25 }
  0x1c   :  { %381 = vmatpush.bf16.msra.mxu2 %v782_v26 }
  0x1d   :  { %400 = vmatpush.bf16.msra.mxu3 %v790_v27 }
  0x1e   :  { %344 = vmatpush.bf16.msra.mxu0 %v765_v28 }
  0x1f   :  { %363 = vmatpush.bf16.msra.mxu1 %v773_v29 }
  0x20   :  { %382 = vmatpush.bf16.msra.mxu2 %v781_v30 }
  0x21   :  { %401 = vmatpush.bf16.msra.mxu3 %v789_v31  ;;  %345 = vmatmul.bf16.vlgmr.msra.gmra.mxu0 %v586_v40 }
  0x22   :  { %364 = vmatmul.bf16.vlgmr.msra.gmra.mxu1 %v590_v41  ;;  %452 = vmatpush.bf16.msrb.mxu0 %v798_v56 }
  0x23   :  { %383 = vmatmul.bf16.vlgmr.msra.gmra.mxu2 %v594_v42  ;;  %799 = vmatpush.bf16.msrb.mxu1 %v798_v56  ;;  %v804_v56 = vld [vmem:[#allocation2] ss:$0 sm:$0xff] }
  0x24   :  { %402 = vmatmul.bf16.vlgmr.msra.gmra.mxu3 %v598_v43 }
  0x26   :  { %453 = vmatpush.bf16.msrb.mxu0 %v797_v57 }
  0x27   :  { %800 = vmatpush.bf16.msrb.mxu1 %v797_v57 }
  0x31   :  { %350 = vmatmul.bf16.gmra.mxu0 %v602_v52 }
  0x32   :  { %369 = vmatmul.bf16.gmra.mxu1 %v606_v53 }
  0x33   :  { %388 = vmatmul.bf16.gmra.mxu2 %v610_v54 }
  0x34   :  { %407 = vmatmul.bf16.gmra.mxu3 %v614_v55 }
  0x9e   :  { %v346_v59 = vpop.f32.mrf.mxu0 }
  0x9f   :  { %v365_v60 = vpop.f32.mrf.mxu1  ;;  %v347_v61 = vadd.f32 %v801_v58, %v346_v59 }
  0xa1   :  { %v366_v0 = vadd.f32 %v365_v60, %v347_v61 }
  0xa6   :  { %v384_v62 = vpop.f32.mrf.mxu2  ;;  %v348_v1 = vpop.f32.mrf.mxu0 }
  0xa7   :  { %v403_v63 = vpop.f32.mrf.mxu3  ;;  %v367_v2 = vpop.f32.mrf.mxu1  ;;  %v349_v3 = vadd.f32 %v801_v58, %v348_v1  ;;  %v385_v4 = vadd.f32 %v384_v62, %v366_v0 }
  0xa9   :  { %v368_v5 = vadd.f32 %v367_v2, %v349_v3  ;;  %v404_v8 = vadd.f32 %v403_v63, %v385_v4 }
  0xab   :  { %v413_v13 = vmax.f32 %v404_v8, 0.0 }
  0xae   :  { %v386_v6 = vpop.f32.mrf.mxu2  ;;  %v351_v10 = vpop.f32.mrf.mxu0 }
  0xaf   :  { %v405_v7 = vpop.f32.mrf.mxu3  ;;  %v387_v9 = vadd.f32 %v386_v6, %v368_v5  ;;  %v370_v12 = vpop.f32.mrf.mxu1  ;;  %v352_v15 = vadd.f32 %v801_v58, %v351_v10 }
  0xb1   :  { %v406_v11 = vadd.f32 %v405_v7, %v387_v9  ;;  %v371_v19 = vadd.f32 %v370_v12, %v352_v15 }
  0xb3   :  { %v414_v14 = vmax.f32 %v406_v11, 0.0 }
  0xb5   :  { %v417_v16 = vpack.c.bf16 %v414_v14, %v413_v13 }
  0xb6   :  { %v389_v17 = vpop.f32.mrf.mxu2  ;;  %v353_v20 = vpop.f32.mrf.mxu0 }
  0xb7   :  { %v408_v18 = vpop.f32.mrf.mxu3  ;;  %751 = vmatmul.msk.bf16.vlgmr.msrb.gmra.mxu0 %vm439_vm0, %v417_v16  ;;  %v354_v21 = vadd.f32 %v801_v58, %v353_v20  ;;  %v390_v22 = vadd.f32 %v389_v17, %v371_v19  ;;  %v372_v23 = vpop.f32.mrf.mxu1 }
  0xb9   :  { %v373_v24 = vadd.f32 %v372_v23, %v354_v21  ;;  %v409_v26 = vadd.f32 %v408_v18, %v390_v22 }
  0xbb   :  { %v415_v30 = vmax.f32 %v409_v26, 0.0 }
  0xbe   :  { %v391_v25 = vpop.f32.mrf.mxu2 }
  0xbf   :  { %v392_v27 = vadd.f32 %v391_v25, %v373_v24  ;;  %v410_v28 = vpop.f32.mrf.mxu3 }
  0xc1   :  { %v411_v29 = vadd.f32 %v410_v28, %v392_v27 }
  0xc3   :  { %v416_v31 = vmax.f32 %v411_v29, 0.0 }
  0xc5   :  { %v418_v32 = vpack.c.bf16 %v416_v31, %v415_v30 }
  0xc7   :  { %752 = vmatmul.msk.bf16.vlgmr.msrb.gmra.mxu1 %vm439_vm0, %v418_v32 }
 0x134   :  { %v455_v34 = vpop.f32.mrf.mxu0 }
 0x135   :  { %v456_v36 = vadd.f32 %v802_v33, %v455_v34 }
 0x137   :  { %v465_v38 = vmax.f32 %v456_v36, 0.0 }
 0x139   :  { %v473_v39 = vmul.f32 %v803_v37, %v465_v38 }
 0x13b   :  { %v478_v40 = vsel %vm477_vm1, %v473_v39, 0.0 }
 0x13c   :  { %v457_v41 = vpop.f32.mrf.mxu0  ;;  %479 = vadd.xlane.f32.xlu0 %v478_v40 }
 0x13d   :  { %v458_v42 = vadd.f32 %v802_v33, %v457_v41 }
 0x13f   :  { %v466_v43 = vmax.f32 %v458_v42, 0.0 }
 0x141   :  { %v474_v44 = vmul.f32 %v803_v37, %v466_v43 }
 0x143   :  { %v481_v45 = vsel %vm477_vm1, %v474_v44, 0.0 }
 0x144   :  { %v460_v46 = vpop.f32.mrf.mxu1  ;;  %482 = vadd.xlane.f32.xlu0 %v481_v45 }
 0x145   :  { %v461_v47 = vadd.f32 %v802_v33, %v460_v46 }
 0x147   :  { %v467_v48 = vmax.f32 %v461_v47, 0.0 }
 0x149   :  { %v475_v49 = vmul.f32 %v803_v37, %v467_v48 }
 0x14b   :  { %v484_v50 = vsel %vm477_vm1, %v475_v49, 0.0 }
 0x14c   :  { %v462_v51 = vpop.f32.mrf.mxu1  ;;  %485 = vadd.xlane.f32.xlu1 %v484_v50 }
 0x14d   :  { %v463_v52 = vadd.f32 %v802_v33, %v462_v51 }
 0x14f   :  { %v468_v53 = vmax.f32 %v463_v52, 0.0 }
 0x151   :  { %v476_v54 = vmul.f32 %v803_v37, %v468_v53 }
 0x153   :  { %v487_v55 = vsel %vm477_vm1, %v476_v54, 0.0 }
 0x154   :  { %488 = vadd.xlane.f32.xlu1 %v487_v55 }
 0x1af   :  { %v480_v57 = vpop.xlane.xlu0 %479 }
 0x1b0   :  { %v494_v58 = vadd.f32 %v804_v56, %v480_v57 }
 0x1b2   :  { %v753_v59 = vmul.f32 -1.442695, %v494_v58 }
 0x1b4   :  { %805 = vpow2.f32 %v753_v59 }
 0x1b7   :  { %v483_v60 = vpop.xlane.xlu0 %482 }
 0x1b8   :  { %v495_v61 = vadd.f32 %v804_v56, %v483_v60 }
 0x1ba   :  { %v806_v62 = vpop.eup %805  ;;  %v754_v63 = vmul.f32 -1.442695, %v495_v61 }
 0x1bb   :  { %v510_v0 = vadd.f32 1.0, %v806_v62 }
 0x1bc   :  { %807 = vpow2.f32 %v754_v63 }
 0x1bd   :  { %809 = vrcp.f32 %v510_v0  ;;  %v525_v9 = vand.u32 2147483648, %v510_v0  ;;  %v523_v12 = vand.u32 2147483647, %v510_v0  ;;  %vm519_vm3 = vweird.f32 %v510_v0 }
 0x1bf   :  { %v486_v1 = vpop.xlane.xlu1 %485  ;;  %v526_v18 = vor.u32 1.1754944e-38, %v525_v9  ;;  %vm524_vm6 = vcmp.eq.f32.partialorder %v523_v12, 8.507059e+37 }
 0x1c0   :  { %v496_v2 = vadd.f32 %v804_v56, %v486_v1 }
 0x1c2   :  { %v808_v3 = vpop.eup %807  ;;  %v755_v4 = vmul.f32 -1.442695, %v496_v2 }
 0x1c3   :  { %v810_v5 = vpop.eup %809  ;;  %v511_v6 = vadd.f32 1.0, %v808_v3 }
 0x1c4   :  { %v515_v7 = vmul.f32 %v810_v5, %v510_v0  ;;  %811 = vpow2.f32 %v755_v4  ;;  %vm520_vm2 = vweird.f32 %v810_v5 }
 0x1c5   :  { %813 = vrcp.f32 %v511_v6  ;;  %vm521_vm5 = vmor %vm519_vm3, %vm520_vm2  ;;  %v540_v24 = vand.u32 2147483648, %v511_v6  ;;  %v538_v26 = vand.u32 2147483647, %v511_v6  ;;  %vm534_vm8 = vweird.f32 %v511_v6 }
 0x1c6   :  { %v516_v8 = vsub.f32 1.0, %v515_v7 }
 0x1c7   :  { %v489_v10 = vpop.xlane.xlu1 %488  ;;  %v541_v30 = vor.u32 1.1754944e-38, %v540_v24  ;;  %vm539_vm10 = vcmp.eq.f32.partialorder %v538_v26, 8.507059e+37 }
 0x1c8   :  { %v517_v11 = vmul.f32 %v810_v5, %v516_v8  ;;  %v497_v13 = vadd.f32 %v804_v56, %v489_v10 }
 0x1ca   :  { %v812_v14 = vpop.eup %811  ;;  %v518_v15 = vadd.f32 %v810_v5, %v517_v11  ;;  %v756_v16 = vmul.f32 -1.442695, %v497_v13 }
 0x1cb   :  { %v814_v17 = vpop.eup %813  ;;  %v512_v19 = vadd.f32 1.0, %v812_v14 }
 0x1cc   :  { %v522_v20 = vsel %vm521_vm5, %v810_v5, %v518_v15  ;;  %v530_v21 = vmul.f32 %v814_v17, %v511_v6  ;;  %815 = vpow2.f32 %v756_v16  ;;  %vm535_vm7 = vweird.f32 %v814_v17 }
 0x1cd   :  { %v527_v22 = vsel %vm524_vm6, %v526_v18, %v522_v20  ;;  %817 = vrcp.f32 %v512_v19  ;;  %vm536_vm9 = vmor %vm534_vm8, %vm535_vm7  ;;  %v555_v36 = vand.u32 2147483648, %v512_v19  ;;  %v553_v38 = vand.u32 2147483647, %v512_v19 }
 0x1ce   :  { %575 = vst.msk [vmem:[%s1052_s7] sm:$0xff] %vm574_vm4, %v527_v22  ;;  %v531_v23 = vsub.f32 1.0, %v530_v21  ;;  %vm549_vm12 = vweird.f32 %v512_v19 }
 0x1cf   :  { %v556_v41 = vor.u32 1.1754944e-38, %v555_v36  ;;  %vm554_vm14 = vcmp.eq.f32.partialorder %v553_v38, 8.507059e+37 }
 0x1d0   :  { %v532_v25 = vmul.f32 %v814_v17, %v531_v23 }
 0x1d2   :  { %v816_v27 = vpop.eup %815  ;;  %v533_v28 = vadd.f32 %v814_v17, %v532_v25 }
 0x1d3   :  { %v818_v29 = vpop.eup %817  ;;  %v513_v31 = vadd.f32 1.0, %v816_v27 }
 0x1d4   :  { %v537_v32 = vsel %vm536_vm9, %v814_v17, %v533_v28  ;;  %v545_v33 = vmul.f32 %v818_v29, %v512_v19  ;;  %vm550_vm11 = vweird.f32 %v818_v29 }
 0x1d5   :  { %v542_v34 = vsel %vm539_vm10, %v541_v30, %v537_v32  ;;  %819 = vrcp.f32 %v513_v31  ;;  %vm551_vm13 = vmor %vm549_vm12, %vm550_vm11  ;;  %v570_v46 = vand.u32 2147483648, %v513_v31  ;;  %v568_v48 = vand.u32 2147483647, %v513_v31 }
 0x1d6   :  { %576 = vst.msk [vmem:[%s1052_s7 + $0x8] sm:$0xff] %vm574_vm4, %v542_v34  ;;  %v546_v35 = vsub.f32 1.0, %v545_v33  ;;  %vm564_vm0 = vweird.f32 %v513_v31 }
 0x1d7   :  { %v571_v50 = vor.u32 1.1754944e-38, %v570_v46  ;;  %vm569_vm2 = vcmp.eq.f32.partialorder %v568_v48, 8.507059e+37 }
 0x1d8   :  { %v547_v37 = vmul.f32 %v818_v29, %v546_v35 }
 0x1da   :  { %v548_v39 = vadd.f32 %v818_v29, %v547_v37 }
 0x1db   :  { %v820_v40 = vpop.eup %819 }
 0x1dc   :  { %v552_v42 = vsel %vm551_vm13, %v818_v29, %v548_v39  ;;  %v560_v43 = vmul.f32 %v820_v40, %v513_v31  ;;  %vm565_vm15 = vweird.f32 %v820_v40 }
 0x1dd   :  { %v557_v44 = vsel %vm554_vm14, %v556_v41, %v552_v42  ;;  %vm566_vm1 = vmor %vm564_vm0, %vm565_vm15 }
 0x1de   :  { %577 = vst.msk [vmem:[%s1052_s7 + $0x10] sm:$0xff] %vm574_vm4, %v557_v44  ;;  %v561_v45 = vsub.f32 1.0, %v560_v43 }
 0x1e0   :  { %v562_v47 = vmul.f32 %v820_v40, %v561_v45 }
 0x1e2   :  { %v563_v49 = vadd.f32 %v820_v40, %v562_v47 }
 0x1e4   :  { %v567_v51 = vsel %vm566_vm1, %v820_v40, %v563_v49 }
 0x1e5   :  { %v572_v52 = vsel %vm569_vm2, %v571_v50, %v567_v51 }
 0x1e6   :  { %578 = vst.msk [vmem:[%s1052_s7 + $0x18] sm:$0xff] %vm574_vm4, %v572_v52 }

</bundles_post_ra>
